<compile_context>
chip_gen: v7x
topology: tpu7x:2x2x1
jax: 0.10.0
libtpu: 0.0.40
codegen_flags: <defaults>
</compile_context>

<pallas_src>
import functools

import jax
import jax.numpy as jnp
from jax import lax
from jax.experimental import pallas as pl
from jax.experimental.pallas import tpu as pltpu


def _round_up(n, m):
    return ((n + m - 1) // m) * m


def _largest_divisor_leq(n, k):
    k = max(1, min(k, n))
    for d in range(k, 0, -1):
        if n % d == 0:
            return d
    return 1


def _nconv_kernel(x_ref, a_ref, o_ref, *, group):
    """out[i] = A @ x[i] for the tb fused (batch*channel) panels of this tile.

    x_ref: (tb, W, L)  input tile
    a_ref: (V, W)      mixing matrix (resident across the whole grid)
    o_ref: (tb, V, L)  output tile
    `group` panels are lane-packed per MXU matmul (N ~= group*L lanes).
    """
    tb, _, l = x_ref.shape
    a = a_ref[...]                              # native dtype; MXU accumulates in f32

    def do_group(base, size):
        xs = x_ref[pl.ds(base, size)]           # (size, W, L)
        # Lane-pack `size` panels into one wide RHS -> a single lane-dense MXU
        # matmul instead of `size` tiny (V,W)x(W,L) dots.
        x_cat = jnp.concatenate([xs[i] for i in range(size)], axis=-1)   # (W, size*L)
        big = jnp.dot(a, x_cat, preferred_element_type=jnp.float32)      # (V, size*L)
        out_g = jnp.stack(
            [big[:, i * l:(i + 1) * l] for i in range(size)], axis=0
        ).astype(o_ref.dtype)                                            # (size, V, L)
        o_ref[pl.ds(base, size)] = out_g        # one bulk store per group

    n_full = tb // group
    rem = tb - n_full * group

    if n_full == 1 and rem == 0:
        do_group(0, group)                      # static fast path (small tiles)
    else:
        if n_full > 0:
            def body(gi, carry):
                do_group(gi * group, group)
                return carry
            lax.fori_loop(0, n_full, body, 0)
        if rem > 0:
            do_group(n_full * group, rem)       # static remainder group


def nconv_pallas(x, A, *, row_tile=256, pack_lanes=256,
                 vmem_budget_bytes=28 * 1024 * 1024):
    """Pallas TPU forward of MTGNN `nconv`: einsum('ncwl,vw->ncvl', x, A)."""
    B, C, W, L = x.shape
    V, W2 = A.shape
    assert W2 == W, (A.shape, x.shape)

    A = A.astype(x.dtype)                       # tiny; keep in-kernel dtypes uniform
    BC = B * C
    x_rows = x.reshape(BC, W, L)                # free reshape, no data movement

    itemsize = jnp.dtype(x.dtype).itemsize
    # Padded (8,128)-tiled VMEM footprint of one fused row in each block.
    row_in = _round_up(W, 8) * _round_up(L, 128) * itemsize
    row_out = _round_up(V, 8) * _round_up(L, 128) * itemsize
    a_bytes = _round_up(V, 8) * _round_up(W, 128) * itemsize

    # Biggest tb whose double-buffered in+out blocks fit ~70% of the budget
    # (rest: A, per-group f32 temporaries, headroom).  Safe on v7x's 64 MiB VMEM.
    tb_vmem = max(1, int(0.7 * vmem_budget_bytes) // (2 * (row_in + row_out)))
    tb_target = max(1, min(row_tile, tb_vmem, BC))

    tb = _largest_divisor_leq(BC, tb_target)
    padded = False
    if BC > tb_target and tb < max(1, tb_target // 4):
        # Awkward BC (e.g. large prime): fall back to pad-and-slice rather than
        # collapsing to tiny tiles dominated by per-step overhead.
        tb = tb_target
        padded = True
    num_tiles = pl.cdiv(BC, tb)
    BCp = num_tiles * tb
    if padded and BCp != BC:
        x_rows = jnp.pad(x_rows, ((0, BCp - BC), (0, 0), (0, 0)))

    # MXU lane-pack width: ~256 output lanes per push (128 would also be fine on v5e).
    group = max(1, min(tb, pl.cdiv(pack_lanes, L)))

    # VMEM limit: double-buffered blocks + resident A + f32 group temps + headroom.
    g_lanes = _round_up(group * L, 128)
    temp_bytes = (_round_up(W, 8) + 2 * _round_up(V, 8)) * g_lanes * 4
    vmem_limit = 2 * tb * (row_in + row_out) + 2 * a_bytes + temp_bytes + (4 << 20)
    vmem_limit = int(min(max(vmem_limit, 16 << 20), 48 << 20))

    cost = pl.CostEstimate(
        flops=2 * BCp * V * W * L,
        transcendentals=0,
        bytes_accessed=(BCp * W * L + V * W + BCp * V * L) * itemsize,
    )

    out_rows = pl.pallas_call(
        functools.partial(_nconv_kernel, group=group),
        out_shape=jax.ShapeDtypeStruct((BCp, V, L), x.dtype),
        grid_spec=pltpu.PrefetchScalarGridSpec(
            num_scalar_prefetch=0,
            grid=(num_tiles,),
            in_specs=[
                pl.BlockSpec((tb, W, L), lambda i: (i, 0, 0)),
                pl.BlockSpec((V, W), lambda i: (0, 0)),   # constant index: fetched once
            ],
            out_specs=pl.BlockSpec((tb, V, L), lambda i: (i, 0, 0)),
        ),
        compiler_params=pltpu.CompilerParams(
            dimension_semantics=("parallel",),
            vmem_limit_bytes=vmem_limit,
        ),
        cost_estimate=cost,
    )(x_rows, A)

    if padded and BCp != BC:
        out_rows = out_rows[:BC]
    return out_rows.reshape(B, C, V, L)


if __name__ == "__main__":
    key = jax.random.PRNGKey(0)
    k1, k2, k3 = jax.random.split(key, 3)

    B, C, N_NODES, T = 2, 4, 16, 16
    x = jax.random.normal(k1, (B, C, N_NODES, T), jnp.float32)
    A = jax.random.normal(k2, (N_NODES, N_NODES), jnp.float32)

    out = jax.block_until_ready(nconv_pallas(x, A))
    ref = jnp.einsum('ncwl,vw->ncvl', x, A)
    assert out.shape == ref.shape, (out.shape, ref.shape)
    # Tolerance covers MXU pass/rounding differences vs XLA's einsum lowering.
    assert jnp.allclose(out, ref, atol=1e-2, rtol=1e-2), (
        "max abs err", float(jnp.max(jnp.abs(out - ref))))

    # Non-power-of-two batch*channel exercises the divisor-based tile selection
    # (no pad-and-slice HBM passes).
    x2 = jax.random.normal(k3, (2, 3, N_NODES, T), jnp.float32)
    out2 = jax.block_until_ready(nconv_pallas(x2, A))
    ref2 = jnp.einsum('ncwl,vw->ncvl', x2, A)
    assert out2.shape == ref2.shape, (out2.shape, ref2.shape)
    assert jnp.allclose(out2, ref2, atol=1e-2, rtol=1e-2), (
        "max abs err", float(jnp.max(jnp.abs(out2 - ref2))))

    print("KERNEL_OK")
</pallas_src>

<mosaic_0001>
module attributes {stable_mosaic.version = 11 : i64} {
  func.func @_nconv_kernel(%arg0: i32, %arg1: memref<8x16x16xf32, #tpu.memory_space<vmem>>, %arg2: memref<16x16xf32, #tpu.memory_space<vmem>>, %arg3: memref<8x16x16xf32, #tpu.memory_space<vmem>>) attributes {dimension_semantics = [#tpu.dimension_semantics<parallel>], iteration_bounds = array<i64: 1>, scalar_prefetch = 0 : i64, scratch_operands = 0 : i64, tpu.core_type = #tpu.core_type<tc>, window_params = [{transform_indices = @transform_0, window_bounds = array<i64: 8, 16, 16>}, {pipeline_mode = #tpu.pipeline_mode<synchronous>, transform_indices = @transform_1, window_bounds = array<i64: 16, 16>}, {transform_indices = @transform_2, window_bounds = array<i64: 8, 16, 16>}]} {
    %c0 = arith.constant 0 : index
    %c0_0 = arith.constant 0 : index
    %0 = vector.load %arg2[%c0, %c0_0] : memref<16x16xf32, #tpu.memory_space<vmem>>, vector<16x16xf32>
    %c0_1 = arith.constant 0 : index
    %c0_2 = arith.constant 0 : index
    %c0_3 = arith.constant 0 : index
    %1 = vector.load %arg1[%c0_1, %c0_2, %c0_3] : memref<8x16x16xf32, #tpu.memory_space<vmem>>, vector<8x16x16xf32>
    %2 = vector.extract_strided_slice %1 {offsets = [0, 0, 0], sizes = [1, 16, 16], strides = [1, 1, 1]} : vector<8x16x16xf32> to vector<1x16x16xf32>
    %3 = vector.shape_cast %2 : vector<1x16x16xf32> to vector<16x16xf32>
    %4 = vector.extract_strided_slice %1 {offsets = [1, 0, 0], sizes = [1, 16, 16], strides = [1, 1, 1]} : vector<8x16x16xf32> to vector<1x16x16xf32>
    %5 = vector.shape_cast %4 : vector<1x16x16xf32> to vector<16x16xf32>
    %6 = vector.extract_strided_slice %1 {offsets = [2, 0, 0], sizes = [1, 16, 16], strides = [1, 1, 1]} : vector<8x16x16xf32> to vector<1x16x16xf32>
    %7 = vector.shape_cast %6 : vector<1x16x16xf32> to vector<16x16xf32>
    %8 = vector.extract_strided_slice %1 {offsets = [3, 0, 0], sizes = [1, 16, 16], strides = [1, 1, 1]} : vector<8x16x16xf32> to vector<1x16x16xf32>
    %9 = vector.shape_cast %8 : vector<1x16x16xf32> to vector<16x16xf32>
    %10 = vector.extract_strided_slice %1 {offsets = [4, 0, 0], sizes = [1, 16, 16], strides = [1, 1, 1]} : vector<8x16x16xf32> to vector<1x16x16xf32>
    %11 = vector.shape_cast %10 : vector<1x16x16xf32> to vector<16x16xf32>
    %12 = vector.extract_strided_slice %1 {offsets = [5, 0, 0], sizes = [1, 16, 16], strides = [1, 1, 1]} : vector<8x16x16xf32> to vector<1x16x16xf32>
    %13 = vector.shape_cast %12 : vector<1x16x16xf32> to vector<16x16xf32>
    %14 = vector.extract_strided_slice %1 {offsets = [6, 0, 0], sizes = [1, 16, 16], strides = [1, 1, 1]} : vector<8x16x16xf32> to vector<1x16x16xf32>
    %15 = vector.shape_cast %14 : vector<1x16x16xf32> to vector<16x16xf32>
    %16 = vector.extract_strided_slice %1 {offsets = [7, 0, 0], sizes = [1, 16, 16], strides = [1, 1, 1]} : vector<8x16x16xf32> to vector<1x16x16xf32>
    %17 = vector.shape_cast %16 : vector<1x16x16xf32> to vector<16x16xf32>
    %18 = tpu.concatenate %3, %5, %7, %9, %11, %13, %15, %17 in 1 : vector<16x16xf32>, vector<16x16xf32>, vector<16x16xf32>, vector<16x16xf32>, vector<16x16xf32>, vector<16x16xf32>, vector<16x16xf32>, vector<16x16xf32> -> vector<16x128xf32>
    %cst = arith.constant dense<0.000000e+00> : vector<16x128xf32>
    %19 = tpu.matmul %0, %18, %cst {dimension_numbers = #tpu.dot_dimension_numbers<[1], [0], [0], [1], [0, 0, 1, 1], [], []>} : vector<16x16xf32>, vector<16x128xf32>, vector<16x128xf32> -> vector<16x128xf32>
    %20 = vector.extract_strided_slice %19 {offsets = [0, 0], sizes = [16, 16], strides = [1, 1]} : vector<16x128xf32> to vector<16x16xf32>
    %21 = vector.extract_strided_slice %19 {offsets = [0, 16], sizes = [16, 16], strides = [1, 1]} : vector<16x128xf32> to vector<16x16xf32>
    %22 = vector.extract_strided_slice %19 {offsets = [0, 32], sizes = [16, 16], strides = [1, 1]} : vector<16x128xf32> to vector<16x16xf32>
    %23 = vector.extract_strided_slice %19 {offsets = [0, 48], sizes = [16, 16], strides = [1, 1]} : vector<16x128xf32> to vector<16x16xf32>
    %24 = vector.extract_strided_slice %19 {offsets = [0, 64], sizes = [16, 16], strides = [1, 1]} : vector<16x128xf32> to vector<16x16xf32>
    %25 = vector.extract_strided_slice %19 {offsets = [0, 80], sizes = [16, 16], strides = [1, 1]} : vector<16x128xf32> to vector<16x16xf32>
    %26 = vector.extract_strided_slice %19 {offsets = [0, 96], sizes = [16, 16], strides = [1, 1]} : vector<16x128xf32> to vector<16x16xf32>
    %27 = vector.extract_strided_slice %19 {offsets = [0, 112], sizes = [16, 16], strides = [1, 1]} : vector<16x128xf32> to vector<16x16xf32>
    %28 = vector.shape_cast %20 : vector<16x16xf32> to vector<1x16x16xf32>
    %29 = vector.shape_cast %21 : vector<16x16xf32> to vector<1x16x16xf32>
    %30 = vector.shape_cast %22 : vector<16x16xf32> to vector<1x16x16xf32>
    %31 = vector.shape_cast %23 : vector<16x16xf32> to vector<1x16x16xf32>
    %32 = vector.shape_cast %24 : vector<16x16xf32> to vector<1x16x16xf32>
    %33 = vector.shape_cast %25 : vector<16x16xf32> to vector<1x16x16xf32>
    %34 = vector.shape_cast %26 : vector<16x16xf32> to vector<1x16x16xf32>
    %35 = vector.shape_cast %27 : vector<16x16xf32> to vector<1x16x16xf32>
    %36 = tpu.concatenate %28, %29, %30, %31, %32, %33, %34, %35 in 0 : vector<1x16x16xf32>, vector<1x16x16xf32>, vector<1x16x16xf32>, vector<1x16x16xf32>, vector<1x16x16xf32>, vector<1x16x16xf32>, vector<1x16x16xf32>, vector<1x16x16xf32> -> vector<8x16x16xf32>
    %c0_4 = arith.constant 0 : index
    %c0_5 = arith.constant 0 : index
    %c0_6 = arith.constant 0 : index
    %37 = vector.load %arg3[%c0_4, %c0_5, %c0_6] : memref<8x16x16xf32, #tpu.memory_space<vmem>>, vector<8x16x16xf32>
    tpu.vector_store %arg3[%c0_4, %c0_5, %c0_6], %36 {strides = array<i32>} : memref<8x16x16xf32, #tpu.memory_space<vmem>>, vector<8x16x16xf32>,
    return
  }
  func.func @transform_0(%arg0: i32) -> (i32, i32, i32) {
    %c0_i32 = arith.constant 0 : i32
    %c0_i32_0 = arith.constant 0 : i32
    %c0_i32_1 = arith.constant 0 : i32
    return %arg0, %c0_i32, %c0_i32_0 : i32, i32, i32
  }
  func.func @transform_1(%arg0: i32) -> (i32, i32) {
    %c0_i32 = arith.constant 0 : i32
    %c0_i32_0 = arith.constant 0 : i32
    %c0_i32_1 = arith.constant 0 : i32
    return %c0_i32, %c0_i32_0 : i32, i32
  }
  func.func @transform_2(%arg0: i32) -> (i32, i32, i32) {
    %c0_i32 = arith.constant 0 : i32
    %c0_i32_0 = arith.constant 0 : i32
    %c0_i32_1 = arith.constant 0 : i32
    return %arg0, %c0_i32, %c0_i32_0 : i32, i32, i32
  }
}

</mosaic_0001>

<bundles_post_ra>
// kernel: tpu_custom_call.1
= control target key start
LH: loop header
LB: loop body
LE: loop exit
PB: predicated region body
PF: predicated region fallthrough
CT: control target
= control target key end

     0   :  { %7 = vsyncpa [#allocation3], 0  ;;  %s545_s0 = inlined_call_operand.hbm [shape: f32[8,16,16], index: 0, kind: input, shape index: {}]   ;;  %s546_s1 = inlined_call_operand.hbm [shape: f32[16,16], index: 1, kind: input, shape index: {}]   ;;  %s547_s2 = inlined_call_operand.hbm [shape: f32[8,16,16], index: 2, kind: output, shape index: {}]  }
   0x1   :  { %8 = vsyncpa [#allocation6], 0 }
   0x2   :  { %9 = vsyncpa [#allocation4], 0  ;;  %s430_s9 = smov [#allocation2]   ;;  %s358_s13 = scalar_lea.hbm %s545_s0, 2048 }
   0x3   :  { %s15_s10 = sshll.u32 %s430_s9, 4  ;;  %p359_p0 = scmp.ne.s32.totalorder %s545_s0, %s358_s13  ;;  %s16_s10 = int_to_ptr.vmem [resolvable:$true] %s15_s10 }
   0x4   :  { %p362_p1 = scmp.lt.u32.totalorder %s358_s13, %s545_s0 }
   0x6   :  { %p364_p2 = pnand %p362_p1, %p359_p0 }
   0x8   :  { %367 = shalt.err (!%p364_p2)
}
   0x9   :  { %s368_s18 = scalar_lea.vmem %s16_s10, 2048  ;;  %p373_p4 = scmp.lt.s32.totalorder %s16_s10, %s16_s10 }
   0xa   :  { %p369_p3 = scmp.ne.s32.totalorder %s16_s10, %s368_s18  ;;  %p374_p5 = scmp.lt.s32.totalorder %s368_s18, %s368_s18 }
   0xc   :  { %p375_p6 = por %p374_p5, %p373_p4 }
   0xe   :  { %p376_p7 = pnand %p375_p6, %p369_p3 }
  0x10   :  { %379 = shalt.err (!%p376_p7)
}
  0x11   :  { %s431_s19 = smov 128   ;;  %s432_s20 = smov 8  }
  0x12   :  { %21 = dma.hbm_to_vmem [thread:$0]  %s545_s0, 2048, %s16_s10, [#allocation3], %s431_s19, %s431_s19, %s432_s20  }
  0x13   :  { %s433_s23 = smov [#allocation5]   ;;  %s380_s27 = scalar_lea.hbm %s546_s1, 256 }
  0x14   :  { %s27_s24 = sshll.u32 %s433_s23, 4  ;;  %p381_p8 = scmp.ne.s32.totalorder %s546_s1, %s380_s27  ;;  %s28_s24 = int_to_ptr.vmem [resolvable:$true] %s27_s24 }
  0x15   :  { %p384_p9 = scmp.lt.u32.totalorder %s380_s27, %s546_s1 }
  0x17   :  { %p386_p10 = pnand %p384_p9, %p381_p8 }
  0x19   :  { %389 = shalt.err (!%p386_p10)
}
  0x1a   :  { %s390_s4 = scalar_lea.vmem %s28_s24, 256  ;;  %p395_p12 = scmp.lt.s32.totalorder %s28_s24, %s28_s24 }
  0x1b   :  { %p391_p11 = scmp.ne.s32.totalorder %s28_s24, %s390_s4  ;;  %p396_p13 = scmp.lt.s32.totalorder %s390_s4, %s390_s4 }
  0x1d   :  { %p397_p0 = por %p396_p13, %p395_p12 }
  0x1f   :  { %p398_p1 = pnand %p397_p0, %p391_p11 }
  0x21   :  { %401 = shalt.err (!%p398_p1)
}
  0x22   :  { %33 = dma.hbm_to_vmem [thread:$0]  %s546_s1, 256, %s28_s24, [#allocation6], %s431_s19, %s431_s19, %s432_s20  }
  0x23   :  { %424 = dma.done.wait [#allocation3], 2048  }
  0x24   :  { %425 = vsyncadd [#allocation3], 4294965248 }
  0x25   :  { %426 = dma.done.wait [#allocation6], 256  }
  0x26   :  { %427 = vsyncadd [#allocation6], 4294967040  ;;  %v44_v0 = vld [vmem:[#allocation2 + $0x10] sm:$0xff]  ;;  %v45_v1 = vld [vmem:[#allocation2 + $0x18] sm:$0xff]  ;;  %s434_s6 = smov 16   ;;  %s435_s7 = smov 48  }
  0x27   :  { %v48_v2 = vld [vmem:[#allocation2 + $0x30] sm:$0xff]  ;;  %v323_v3 = vpack.i.bf16 %v45_v1, %v44_v0  ;;  %v49_v4 = vld [vmem:[#allocation2 + $0x38] sm:$0xff]  ;;  %v46_v5 = vld [vmem:[#allocation2 + $0x20] sm:$0xff]  ;;  %s436_s1 = smov 32   ;;  %s437_s8 = smov 64   ;;  %vm114_vm0 = vcmask 130048  }
  0x28   :  { %v47_v6 = vld [vmem:[#allocation2 + $0x28] sm:$0xff]  ;;  %v333_v7 = vpack.i.bf16 %v49_v4, %v48_v2  ;;  %v50_v8 = vld [vmem:[#allocation2 + $0x40] sm:$0xff]  ;;  %v52_v12 = vld [vmem:[#allocation2 + $0x50] sm:$0xff]  ;;  %s438_s9 = smov 80   ;;  %s439_s10 = smov 96   ;;  %vm117_vm1 = vcmask 261120  }
  0x29   :  { %v51_v9 = vld [vmem:[#allocation2 + $0x48] sm:$0xff]  ;;  %324 = vrot.lane.b32.xlu0 %v323_v3, %s434_s6  ;;  %v328_v10 = vpack.i.bf16 %v47_v6, %v46_v5  ;;  %v53_v13 = vld [vmem:[#allocation2 + $0x58] sm:$0xff]  ;;  %v54_v14 = vld [vmem:[#allocation2 + $0x60] sm:$0xff]  ;;  %s440_s11 = smov 112   ;;  %vm120_vm2 = vcmask 392192   ;;  %vm123_vm3 = vcmask 523264  }
  0x2a   :  { %334 = vrot.lane.b32.xlu1 %v333_v7, %s435_s7  ;;  %v338_v11 = vpack.i.bf16 %v51_v9, %v50_v8  ;;  %v55_v15 = vld [vmem:[#allocation2 + $0x68] sm:$0xff]  ;;  %v343_v16 = vpack.i.bf16 %v53_v13, %v52_v12  ;;  %v56_v18 = vld [vmem:[#allocation2 + $0x70] sm:$0xff]  ;;  %v57_v19 = vld [vmem:[#allocation2 + $0x78] sm:$0xff]  ;;  %vm126_vm4 = vcmask 654336   ;;  %vm129_vm5 = vcmask 785408   ;;  %s441_s12 = smov [#allocation7]  }
  0x2b   :  { %v348_v17 = vpack.i.bf16 %v55_v15, %v54_v14  ;;  %v40_v20 = vld [vmem:[#allocation5] sm:$0xff]  ;;  %v353_v21 = vpack.i.bf16 %v57_v19, %v56_v18  ;;  %v43_v27 = vld [vmem:[#allocation2 + $0x8] sm:$0xff]  ;;  %vm132_vm6 = vcmask 916480   ;;  %s281_s13 = sshll.u32 %s441_s12, 4  ;;  %s282_s13 = int_to_ptr.vmem [resolvable:$true] %s281_s13 }
  0x2c   :  { %304 = vmatprep.mubr.msk.f32.mxu0 %vm114_vm0, %v40_v20  ;;  %v42_v26 = vld [vmem:[#allocation2] sm:$0xff]  ;;  %v41_v60 = vld [vmem:[#allocation5 + $0x8] sm:$0xff]  ;;  %s402_s14 = scalar_lea.vmem %s282_s13, 2048  ;;  %p407_p3 = scmp.lt.s32.totalorder %s282_s13, %s282_s13 }
  0x2d   :  { %329 = vrot.lane.b32.xlu0 %v328_v10, %s436_s1  ;;  %p403_p2 = scmp.ne.s32.totalorder %s282_s13, %s402_s14  ;;  %p408_p4 = scmp.lt.s32.totalorder %s402_s14, %s402_s14 }
  0x2e   :  { %339 = vrot.lane.b32.xlu1 %v338_v11, %s437_s8 }
  0x2f   :  { %p409_p5 = por %p408_p4, %p407_p3 }
  0x31   :  { %344 = vrot.lane.b32.xlu0 %v343_v16, %s438_s9  ;;  %p410_p6 = pnand %p409_p5, %p403_p2 }
  0x32   :  { %349 = vrot.lane.b32.xlu1 %v348_v17, %s439_s10 }
  0x35   :  { %354 = vrot.lane.b32.xlu0 %v353_v21, %s440_s11 }
  0x9b   :  { %v325_v22 = vpop.permute.xlu0 %324 }
  0x9c   :  { %v335_v23 = vpop.permute.xlu1 %334  ;;  %v327_v24 = vunpack.i.h.bf16 %v325_v22  ;;  %v326_v25 = vunpack.i.l.bf16 %v325_v22 }
  0x9d   :  { %v337_v29 = vunpack.i.h.bf16 %v335_v23  ;;  %v336_v30 = vunpack.i.l.bf16 %v335_v23 }
  0x9e   :  { %v115_v34 = vsel %vm114_vm0, %v42_v26, %v326_v25  ;;  %v116_v35 = vsel %vm114_vm0, %v43_v27, %v327_v24 }
  0x9f   :  { %v330_v28 = vpop.permute.xlu0 %329 }
  0xa0   :  { %v332_v31 = vunpack.i.h.bf16 %v330_v28  ;;  %v331_v32 = vunpack.i.l.bf16 %v330_v28  ;;  %v340_v33 = vpop.permute.xlu1 %339 }
  0xa1   :  { %v342_v36 = vunpack.i.h.bf16 %v340_v33  ;;  %v341_v37 = vunpack.i.l.bf16 %v340_v33 }
  0xa2   :  { %v118_v38 = vsel %vm117_vm1, %v115_v34, %v331_v32  ;;  %v119_v39 = vsel %vm117_vm1, %v116_v35, %v332_v31 }
  0xa3   :  { %v121_v40 = vsel %vm120_vm2, %v118_v38, %v336_v30  ;;  %v122_v41 = vsel %vm120_vm2, %v119_v39, %v337_v29  ;;  %v345_v42 = vpop.permute.xlu0 %344 }
  0xa4   :  { %v124_v43 = vsel %vm123_vm3, %v121_v40, %v341_v37  ;;  %v125_v44 = vsel %vm123_vm3, %v122_v41, %v342_v36  ;;  %v347_v45 = vunpack.i.h.bf16 %v345_v42  ;;  %v346_v46 = vunpack.i.l.bf16 %v345_v42  ;;  %v350_v47 = vpop.permute.xlu1 %349 }
  0xa5   :  { %v352_v48 = vunpack.i.h.bf16 %v350_v47  ;;  %v351_v49 = vunpack.i.l.bf16 %v350_v47 }
  0xa6   :  { %v127_v50 = vsel %vm126_vm4, %v124_v43, %v346_v46  ;;  %v128_v51 = vsel %vm126_vm4, %v125_v44, %v347_v45 }
  0xa7   :  { %v355_v52 = vpop.permute.xlu0 %354  ;;  %v130_v55 = vsel %vm129_vm5, %v127_v50, %v351_v49  ;;  %v131_v56 = vsel %vm129_vm5, %v128_v51, %v352_v48 }
  0xa8   :  { %v357_v53 = vunpack.i.h.bf16 %v355_v52  ;;  %v356_v54 = vunpack.i.l.bf16 %v355_v52 }
  0xaa   :  { %v133_v57 = vsel %vm132_vm6, %v130_v55, %v356_v54  ;;  %v134_v58 = vsel %vm132_vm6, %v131_v56, %v357_v53 }
  0xab   :  { %v307_v59 = vpack.c.bf16 %v134_v58, %v133_v57 }
  0xad   :  { %308 = vmatprep.subr.bf16.mxu0 %v307_v59 }
  0xae   :  { %310 = vmatpush3.bf16.msra.mxu0 %v307_v59 }
  0xb1   :  { %305 = vmatmul.mubr.msk.f32.vlgmr.msra.gmra.mrb[0].mxu0 %vm114_vm0, %v41_v60 }
 0x184   :  { %v306_v61 = vpop.f32.mrb[0].mxu0 }
 0x185   :  { %261 = vst.msk [vmem:[#allocation7 + $0x8] sm:$0xff] %vm114_vm0, %v306_v61  ;;  %220 = vrot.lane.b32.xlu0 %v306_v61, %s440_s11  ;;  %v207_v62 = vpop.f32.mrb[1].mxu0 }
 0x186   :  { %260 = vst.msk [vmem:[#allocation7] sm:$0xff] %vm114_vm0, %v207_v62  ;;  %218 = vrot.lane.b32.xlu1 %v207_v62, %s440_s11 }
 0x189   :  { %226 = vrot.lane.b32.xlu0 %v306_v61, %s439_s10 }
 0x18a   :  { %224 = vrot.lane.b32.xlu1 %v207_v62, %s439_s10 }
 0x18d   :  { %232 = vrot.lane.b32.xlu0 %v306_v61, %s438_s9 }
 0x18e   :  { %230 = vrot.lane.b32.xlu1 %v207_v62, %s438_s9 }
 0x191   :  { %238 = vrot.lane.b32.xlu0 %v306_v61, %s437_s8 }
 0x192   :  { %236 = vrot.lane.b32.xlu1 %v207_v62, %s437_s8 }
 0x195   :  { %244 = vrot.lane.b32.xlu0 %v306_v61, %s435_s7 }
 0x196   :  { %242 = vrot.lane.b32.xlu1 %v207_v62, %s435_s7 }
 0x199   :  { %250 = vrot.lane.b32.xlu0 %v306_v61, %s436_s1 }
 0x19a   :  { %248 = vrot.lane.b32.xlu1 %v207_v62, %s436_s1 }
 0x19d   :  { %256 = vrot.lane.b32.xlu0 %v306_v61, %s434_s6 }
 0x19e   :  { %254 = vrot.lane.b32.xlu1 %v207_v62, %s434_s6 }
 0x1f7   :  { %v221_v63 = vpop.permute.xlu0 %220 }
 0x1f8   :  { %263 = vst.msk [vmem:[#allocation7 + $0x18] sm:$0xff] %vm114_vm0, %v221_v63  ;;  %v219_v0 = vpop.permute.xlu1 %218 }
 0x1f9   :  { %262 = vst.msk [vmem:[#allocation7 + $0x10] sm:$0xff] %vm114_vm0, %v219_v0 }
 0x1fb   :  { %v227_v1 = vpop.permute.xlu0 %226 }
 0x1fc   :  { %265 = vst.msk [vmem:[#allocation7 + $0x28] sm:$0xff] %vm114_vm0, %v227_v1  ;;  %v225_v2 = vpop.permute.xlu1 %224 }
 0x1fd   :  { %264 = vst.msk [vmem:[#allocation7 + $0x20] sm:$0xff] %vm114_vm0, %v225_v2 }
 0x1ff   :  { %v233_v3 = vpop.permute.xlu0 %232 }
 0x200   :  { %267 = vst.msk [vmem:[#allocation7 + $0x38] sm:$0xff] %vm114_vm0, %v233_v3  ;;  %v231_v4 = vpop.permute.xlu1 %230 }
 0x201   :  { %266 = vst.msk [vmem:[#allocation7 + $0x30] sm:$0xff] %vm114_vm0, %v231_v4 }
 0x203   :  { %v239_v5 = vpop.permute.xlu0 %238 }
 0x204   :  { %269 = vst.msk [vmem:[#allocation7 + $0x48] sm:$0xff] %vm114_vm0, %v239_v5  ;;  %v237_v6 = vpop.permute.xlu1 %236 }
 0x205   :  { %268 = vst.msk [vmem:[#allocation7 + $0x40] sm:$0xff] %vm114_vm0, %v237_v6 }
 0x207   :  { %v245_v7 = vpop.permute.xlu0 %244 }
 0x208   :  { %271 = vst.msk [vmem:[#allocation7 + $0x58] sm:$0xff] %vm114_vm0, %v245_v7  ;;  %v243_v8 = vpop.permute.xlu1 %242 }
 0x209   :  { %270 = vst.msk [vmem:[#allocation7 + $0x50] sm:$0xff] %vm114_vm0, %v243_v8 }
 0x20b   :  { %v251_v9 = vpop.permute.xlu0 %250 }
 0x20c   :  { %273 = vst.msk [vmem:[#allocation7 + $0x68] sm:$0xff] %vm114_vm0, %v251_v9  ;;  %v249_v10 = vpop.permute.xlu1 %248 }
 0x20d   :  { %272 = vst.msk [vmem:[#allocation7 + $0x60] sm:$0xff] %vm114_vm0, %v249_v10 }
 0x20f   :  { %v257_v11 = vpop.permute.xlu0 %256 }
 0x210   :  { %275 = vst.msk [vmem:[#allocation7 + $0x78] sm:$0xff] %vm114_vm0, %v257_v11  ;;  %v255_v12 = vpop.permute.xlu1 %254 }
 0x211   :  { %274 = vst.msk [vmem:[#allocation7 + $0x70] sm:$0xff] %vm114_vm0, %v255_v12 }
 0x212   :  { %413 = shalt.err (!%p410_p6)
}
 0x213   :  { %s414_s17 = scalar_lea.hbm %s547_s2, 2048 }
 0x214   :  { %p415_p7 = scmp.ne.s32.totalorder %s547_s2, %s414_s17  ;;  %p418_p8 = scmp.lt.u32.totalorder %s414_s17, %s547_s2 }
 0x216   :  { %p420_p9 = pnand %p418_p8, %p415_p7 }
 0x218   :  { %423 = shalt.err (!%p420_p9)
}
 0x219   :  { %287 = dma.vmem_to_hbm [thread:$0]  %s282_s13, 2048, %s547_s2, [#allocation4], %s431_s19, %s431_s19, %s432_s20  }
 0x21a   :  { %428 = dma.done.wait [#allocation4], 2048  }
 0x21b   :  { %429 = vsyncadd [#allocation4], 4294965248 }
 0x21c   :  { %291 = vsyncpa [#allocation3], 1 }
 0x21d   :  { %292 = vsyncpa [#allocation6], 1 }
 0x21e   :  { %293 = vsyncpa [#allocation4], 1 }

</bundles_post_ra>
